<compile_context>
chip_gen: v7x
topology: tpu7x:2x2x1
jax: 0.10.0
libtpu: 0.0.40
codegen_flags: <defaults>
</compile_context>

<pallas_src>
import jax
import jax.numpy as jnp
from jax.experimental import pallas as pl
from jax.experimental.pallas import tpu as pltpu

_LANE = 128
_SUBLANE = 8


def _round_up(v, m):
    return ((v + m - 1) // m) * m


def _cdiv(a, b):
    return (a + b - 1) // b


def _hw_params():
    """Generation-aware VMEM budget / pipelining knobs."""
    vmem = 64 * 1024 * 1024
    try:
        info = pltpu.get_tpu_info()
        vmem = int(getattr(info, "vmem_capacity_bytes", vmem))
    except Exception:
        pass
    if vmem >= 100 * 1024 * 1024:
        # v5e / v6e class: 128 MiB physical VMEM, single TensorCore.
        return dict(block_budget=48 * 1024 * 1024,
                    vmem_limit=96 * 1024 * 1024,
                    min_steps=2)
    # v7x class: 64 MiB physical VMEM, 2 TensorCores -> >=4 grid steps so each
    # core still double-buffers its DMA.
    return dict(block_budget=20 * 1024 * 1024,
                vmem_limit=48 * 1024 * 1024,
                min_steps=4)


# ----------------------------------------------------------------------------
# Kernels
# ----------------------------------------------------------------------------
def _conv1x1_kernel(x_ref, w_ref, b_ref, o_ref):
    """Plain 1x1 conv on a flat (rows, Cin) tile: one whole-tile matmul."""
    y = jnp.dot(x_ref[...], w_ref[...], preferred_element_type=jnp.float32)
    o_ref[...] = (y + b_ref[...].astype(jnp.float32)).astype(o_ref.dtype)


def _make_upadd_kernel(cin_e, cout_p, tr2, w2p, block_diag):
    """Fused 1x1 conv + nearest 2x-upsampled lateral add.

    Blocks are flat pixel-pair views (row index = image_row * w2p + pair_col):
      x_ref:   (tile_rows * w2p, xlast)   xlast = [even-pixel ch | odd-pixel ch]
      low_ref: (tr2 * w2p, cout_p)        one lateral row per output row-pair
      o_ref:   (tile_rows * w2p, 2*cout_p)
    Whole-tile matmuls fill the MXU M dimension; bias + lateral adds happen
    once per tile on a (tr2, 2, w2p, cout_p) view (free reshapes: w2p % 8 == 0)
    and results go out via lane-aligned slice stores (no concat).
    """
    m_rows = 2 * tr2 * w2p

    def kernel(x_ref, w_ref, b_ref, low_ref, o_ref):
        w = w_ref[...]
        b = b_ref[...].astype(jnp.float32)                      # (1, cout_p)
        if block_diag:
            # Cin < 128: single matmul against a block-diagonal weight emits
            # [even | odd] outputs directly; x stays at native channel width.
            y = jnp.dot(x_ref[...], w, preferred_element_type=jnp.float32)
            ye = y[:, :cout_p]
            yo = y[:, cout_p:]
        else:
            ye = jnp.dot(x_ref[:, :cin_e], w, preferred_element_type=jnp.float32)
            yo = jnp.dot(x_ref[:, cin_e:], w, preferred_element_type=jnp.float32)
        # Height replication of the lateral: one low row feeds two output rows.
        low = low_ref[...].astype(jnp.float32).reshape(tr2, 1, w2p, cout_p)
        ye = ye.reshape(tr2, 2, w2p, cout_p) + b + low
        yo = yo.reshape(tr2, 2, w2p, cout_p) + b + low
        o_ref[:, :cout_p] = ye.reshape(m_rows, cout_p).astype(o_ref.dtype)
        o_ref[:, cout_p:] = yo.reshape(m_rows, cout_p).astype(o_ref.dtype)

    return kernel


# ----------------------------------------------------------------------------
# Public wrappers
# ----------------------------------------------------------------------------
def fpn_block_nhwc(x, weight, bias, lower_x=None, *, compute_dtype=None):
    """FpnBlock forward on NHWC tensors (preferred: no layout transposes).

    x:       (N, H, W, Cin)
    weight:  (Cout, Cin, 1, 1)  (PyTorch Conv2d layout)
    bias:    (Cout,)
    lower_x: (N, H//2, W//2, Cout) or None
    compute_dtype: optional streaming dtype (e.g. jnp.bfloat16) for x / weight /
      lower_x; accumulation is always f32 and the output keeps x's dtype.
    """
    N, H, W, Cin = x.shape
    Cout = int(weight.shape[0])
    cout_p = _round_up(Cout, _LANE)
    params = _hw_params()
    compiler_params = pltpu.CompilerParams(
        dimension_semantics=("parallel",),
        vmem_limit_bytes=params["vmem_limit"],
    )

    # Weight as (Cin, Cout), output channels padded to a lane multiple so every
    # store is lane-dense.  (For standard FPN dims Cout % 128 == 0 -> no pad.)
    w2d = weight.reshape(Cout, Cin).T
    if cout_p != Cout:
        w2d = jnp.pad(w2d, ((0, 0), (0, cout_p - Cout)))
        b2d = jnp.pad(bias.reshape(1, Cout), ((0, 0), (0, cout_p - Cout)))
    else:
        b2d = bias.reshape(1, Cout)
    b2d = b2d.astype(jnp.float32)

    out_dtype = x.dtype
    if compute_dtype is not None:
        x = x.astype(compute_dtype)
        w2d = w2d.astype(compute_dtype)
        if lower_x is not None:
            lower_x = lower_x.astype(compute_dtype)

    ob = jnp.dtype(out_dtype).itemsize
    wb = w2d.dtype.itemsize

    # ---------------------------------------------------------------- no skip
    if lower_x is None:
        m = N * H * W
        x2 = x.reshape(m, Cin)                 # Cin left at native width
        xb = x2.dtype.itemsize
        per_row = 2 * (_round_up(Cin, _LANE) * xb + cout_p * ob)   # dbl-buffered
        fixed = 2 * (_round_up(Cin, _SUBLANE) * cout_p * wb + _SUBLANE * cout_p * 4)
        avail = max(params["block_budget"] - fixed, per_row * _SUBLANE)
        tm = max(_SUBLANE, min(avail // per_row,
                               max(m // params["min_steps"], _SUBLANE)))
        tm = max(_SUBLANE, (tm // _SUBLANE) * _SUBLANE)
        num_steps = _cdiv(m, tm)
        tm = _round_up(_cdiv(m, num_steps), _SUBLANE)   # balance -> minimal pad
        m_pad = num_steps * tm
        if m_pad != m:
            x2 = jnp.pad(x2, ((0, m_pad - m), (0, 0)))

        cost = pl.CostEstimate(
            flops=2 * m_pad * Cin * cout_p, transcendentals=0,
            bytes_accessed=(m_pad * Cin * xb + Cin * cout_p * wb
                            + cout_p * 4 + m_pad * cout_p * ob))
        y = pl.pallas_call(
            _conv1x1_kernel,
            out_shape=jax.ShapeDtypeStruct((m_pad, cout_p), out_dtype),
            grid=(num_steps,),
            in_specs=[
                pl.BlockSpec((tm, Cin), lambda i: (i, 0)),
                pl.BlockSpec((Cin, cout_p), lambda i: (0, 0)),
                pl.BlockSpec((1, cout_p), lambda i: (0, 0)),
            ],
            out_specs=pl.BlockSpec((tm, cout_p), lambda i: (i, 0)),
            compiler_params=compiler_params,
            cost_estimate=cost,
        )(x2, w2d, b2d)
        y = y[:m].reshape(N, H, W, cout_p)
        return y if cout_p == Cout else y[..., :Cout]

    # ------------------------------------------------------------ lateral path
    Nl, Hl, Wl, Cl = lower_x.shape
    if Nl != N or H != 2 * Hl or W != 2 * Wl:
        raise ValueError("lower_x spatial dims must be exactly half of x "
                         "(nearest 2x upsample).")
    if Cl != Cout:
        raise ValueError("lower_x channel count must equal the conv output channels.")

    nh, w2 = N * H, W // 2
    w2p = _round_up(w2, _SUBLANE)   # pad pair-columns so in-kernel reshapes are free

    block_diag = Cin < _LANE
    if block_diag:
        cin_e = Cin
        x_pair = x.reshape(nh, w2, 2 * Cin)
        w_z = jnp.zeros((Cin, cout_p), w2d.dtype)
        w_mat = jnp.concatenate(
            [jnp.concatenate([w2d, w_z], axis=1),
             jnp.concatenate([w_z, w2d], axis=1)], axis=0)   # (2*Cin, 2*cout_p)
    else:
        cin_e = _round_up(Cin, _LANE)
        x_c = x if cin_e == Cin else jnp.pad(
            x, ((0, 0), (0, 0), (0, 0), (0, cin_e - Cin)))
        x_pair = x_c.reshape(nh, w2, 2 * cin_e)
        w_mat = w2d if cin_e == Cin else jnp.pad(w2d, ((0, cin_e - Cin), (0, 0)))

    low3 = (lower_x if cout_p == Cl
            else jnp.pad(lower_x, ((0, 0), (0, 0), (0, 0), (0, cout_p - Cl))))
    low3 = low3.reshape(nh // 2, w2, cout_p)

    xb = x_pair.dtype.itemsize
    lb = low3.dtype.itemsize
    x_last = x_pair.shape[-1]
    x_last_vmem = _round_up(x_last, _LANE)

    # VMEM bytes per output row-pair (2 output rows + 1 lateral row), x2 buffers.
    per_pair = 2 * (2 * w2p * x_last_vmem * xb
                    + 2 * w2p * 2 * cout_p * ob
                    + w2p * cout_p * lb)
    fixed = 2 * (_round_up(w_mat.shape[0], _SUBLANE)
                 * _round_up(w_mat.shape[1], _LANE) * wb
                 + _SUBLANE * cout_p * 4)
    avail = max(params["block_budget"] - fixed, per_pair)
    nh_pairs = nh // 2
    pairs = max(1, min(avail // per_pair,
                       max(nh_pairs // params["min_steps"], 1),
                       nh_pairs))
    num_steps = _cdiv(nh_pairs, pairs)
    pairs = _cdiv(nh_pairs, num_steps)        # balance -> minimal row padding
    tile_rows = 2 * pairs
    nh_pad = num_steps * tile_rows

    # Pad rows / pair-columns so every block is full; padded region is sliced
    # off afterwards.  Blocks always start on an even image row, so the
    # in-kernel row-pair -> lateral-row mapping stays exact.
    if nh_pad != nh or w2p != w2:
        x_pair = jnp.pad(x_pair, ((0, nh_pad - nh), (0, w2p - w2), (0, 0)))
        low3 = jnp.pad(low3, ((0, nh_pad // 2 - nh // 2), (0, w2p - w2), (0, 0)))
    x2 = x_pair.reshape(nh_pad * w2p, x_last)
    low2 = low3.reshape((nh_pad // 2) * w2p, cout_p)

    m_blk = tile_rows * w2p
    kernel = _make_upadd_kernel(cin_e, cout_p, pairs, w2p, block_diag)
    cost = pl.CostEstimate(
        flops=2 * (N * H * W) * Cin * cout_p, transcendentals=0,
        bytes_accessed=(x2.size * xb + w_mat.size * wb + b2d.size * 4
                        + low2.size * lb + nh_pad * w2p * 2 * cout_p * ob))
    y = pl.pallas_call(
        kernel,
        out_shape=jax.ShapeDtypeStruct((nh_pad * w2p, 2 * cout_p), out_dtype),
        grid=(num_steps,),
        in_specs=[
            pl.BlockSpec((m_blk, x_last), lambda i: (i, 0)),
            pl.BlockSpec(w_mat.shape, lambda i: (0, 0)),
            pl.BlockSpec((1, cout_p), lambda i: (0, 0)),
            pl.BlockSpec((m_blk // 2, cout_p), lambda i: (i, 0)),
        ],
        out_specs=pl.BlockSpec((m_blk, 2 * cout_p), lambda i: (i, 0)),
        compiler_params=compiler_params,
        cost_estimate=cost,
    )(x2, w_mat, b2d, low2)

    y = y.reshape(nh_pad, w2p, 2, cout_p)[:nh, :w2].reshape(N, H, W, cout_p)
    return y if cout_p == Cout else y[..., :Cout]


def fpn_block(x_nchw, weight, bias, lower_x_nchw=None, *, compute_dtype=None):
    """PyTorch-layout (NCHW) wrapper.  Prefer fpn_block_nhwc in NHWC models to
    avoid the layout transposes; jit this wrapper so XLA fuses the transposes
    with the channel padding / slicing."""
    x = jnp.transpose(x_nchw, (0, 2, 3, 1))
    low = None if lower_x_nchw is None else jnp.transpose(lower_x_nchw, (0, 2, 3, 1))
    y = fpn_block_nhwc(x, weight, bias, low, compute_dtype=compute_dtype)
    return jnp.transpose(y, (0, 3, 1, 2))


# ----------------------------------------------------------------------------
# Reference + test
# ----------------------------------------------------------------------------
def _reference_nchw(x, weight, bias, lower_x=None):
    w2d = weight.reshape(weight.shape[0], weight.shape[1])
    y = jnp.einsum("nchw,oc->nohw", x, w2d,
                   precision=jax.lax.Precision.HIGHEST) + bias[None, :, None, None]
    if lower_x is not None:
        y = y + jnp.repeat(jnp.repeat(lower_x, 2, axis=2), 2, axis=3)
    return y


if __name__ == "__main__":
    key = jax.random.PRNGKey(0)
    ks = jax.random.split(key, 8)
    fpn = jax.jit(fpn_block, static_argnames=("compute_dtype",))

    # Case 1: tiny channels (Cin < 128 -> block-diagonal lateral kernel,
    # unpadded-Cin flat kernel), Cout not a lane multiple.
    N, Cin, Cout, H, W = 2, 4, 8, 16, 16
    x = jax.random.normal(ks[0], (N, Cin, H, W), dtype=jnp.float32)
    low = jax.random.normal(ks[1], (N, Cout, H // 2, W // 2), dtype=jnp.float32)
    wgt = jax.random.normal(ks[2], (Cout, Cin, 1, 1), dtype=jnp.float32) * 0.1
    b = jax.random.normal(ks[3], (Cout,), dtype=jnp.float32) * 0.1

    out = jax.block_until_ready(fpn(x, wgt, b, low))
    ref = _reference_nchw(x, wgt, b, low)
    assert out.shape == (N, Cout, H, W)
    assert jnp.allclose(out, ref, atol=1e-5, rtol=1e-5), \
        float(jnp.max(jnp.abs(out - ref)))

    out_nolow = jax.block_until_ready(fpn(x, wgt, b, None))
    ref_nolow = _reference_nchw(x, wgt, b, None)
    assert out_nolow.shape == (N, Cout, H, W)
    assert jnp.allclose(out_nolow, ref_nolow, atol=1e-5, rtol=1e-5), \
        float(jnp.max(jnp.abs(out_nolow - ref_nolow)))

    # Case 2: lane-aligned channels (Cin, Cout multiples of 128 -> two
    # whole-tile matmuls, no channel padding and no output slice), W/2 padded
    # to a sublane multiple.
    N2, Cin2, Cout2, H2, W2 = 1, 128, 128, 8, 8
    x2 = jax.random.normal(ks[4], (N2, Cin2, H2, W2), dtype=jnp.float32)
    low2 = jax.random.normal(ks[5], (N2, Cout2, H2 // 2, W2 // 2), dtype=jnp.float32)
    wgt2 = jax.random.normal(ks[6], (Cout2, Cin2, 1, 1), dtype=jnp.float32) * 0.05
    b2 = jax.random.normal(ks[7], (Cout2,), dtype=jnp.float32) * 0.1

    out2 = jax.block_until_ready(fpn(x2, wgt2, b2, low2))
    ref2 = _reference_nchw(x2, wgt2, b2, low2)
    assert out2.shape == (N2, Cout2, H2, W2)
    assert jnp.allclose(out2, ref2, atol=1e-4, rtol=1e-4), \
        float(jnp.max(jnp.abs(out2 - ref2)))

    print("KERNEL_OK")
</pallas_src>

<mosaic_0001>
module attributes {stable_mosaic.version = 11 : i64} {
  func.func @kernel(%arg0: i32, %arg1: memref<64x8xf32, #tpu.memory_space<vmem>>, %arg2: memref<8x256xf32, #tpu.memory_space<vmem>>, %arg3: memref<1x128xf32, #tpu.memory_space<vmem>>, %arg4: memref<32x128xf32, #tpu.memory_space<vmem>>, %arg5: memref<64x256xf32, #tpu.memory_space<vmem>>) attributes {dimension_semantics = [#tpu.dimension_semantics<parallel>], iteration_bounds = array<i64: 4>, scalar_prefetch = 0 : i64, scratch_operands = 0 : i64, tpu.core_type = #tpu.core_type<tc>, window_params = [{transform_indices = @transform_0, window_bounds = array<i64: 64, 8>}, {pipeline_mode = #tpu.pipeline_mode<synchronous>, transform_indices = @transform_1, window_bounds = array<i64: 8, 256>}, {pipeline_mode = #tpu.pipeline_mode<synchronous>, transform_indices = @transform_2, window_bounds = array<i64: 1, 128>}, {transform_indices = @transform_3, window_bounds = array<i64: 32, 128>}, {transform_indices = @transform_4, window_bounds = array<i64: 64, 256>}]} {
    %c0 = arith.constant 0 : index
    %c0_0 = arith.constant 0 : index
    %0 = vector.load %arg2[%c0, %c0_0] : memref<8x256xf32, #tpu.memory_space<vmem>>, vector<8x256xf32>
    %c0_1 = arith.constant 0 : index
    %c0_2 = arith.constant 0 : index
    %1 = vector.load %arg3[%c0_1, %c0_2] : memref<1x128xf32, #tpu.memory_space<vmem>>, vector<1x128xf32>
    %c0_3 = arith.constant 0 : index
    %c0_4 = arith.constant 0 : index
    %2 = vector.load %arg1[%c0_3, %c0_4] : memref<64x8xf32, #tpu.memory_space<vmem>>, vector<64x8xf32>
    %cst = arith.constant dense<0.000000e+00> : vector<64x256xf32>
    %3 = tpu.matmul %2, %0, %cst {dimension_numbers = #tpu.dot_dimension_numbers<[1], [0], [0], [1], [0, 0, 1, 1], [], []>} : vector<64x8xf32>, vector<8x256xf32>, vector<64x256xf32> -> vector<64x256xf32>
    %4 = vector.extract_strided_slice %3 {offsets = [0, 0], sizes = [64, 128], strides = [1, 1]} : vector<64x256xf32> to vector<64x128xf32>
    %5 = vector.extract_strided_slice %3 {offsets = [0, 128], sizes = [64, 128], strides = [1, 1]} : vector<64x256xf32> to vector<64x128xf32>
    %c0_5 = arith.constant 0 : index
    %c0_6 = arith.constant 0 : index
    %6 = vector.load %arg4[%c0_5, %c0_6] : memref<32x128xf32, #tpu.memory_space<vmem>>, vector<32x128xf32>
    %7 = vector.shape_cast %6 : vector<32x128xf32> to vector<4x1x8x128xf32>
    %8 = vector.shape_cast %4 : vector<64x128xf32> to vector<4x2x8x128xf32>
    %9 = vector.shape_cast %1 : vector<1x128xf32> to vector<1x1x1x128xf32>
    %10 = vector.broadcast %9 : vector<1x1x1x128xf32> to vector<4x2x8x128xf32>
    %11 = arith.addf %8, %10 : vector<4x2x8x128xf32>
    %12 = vector.broadcast %7 : vector<4x1x8x128xf32> to vector<4x2x8x128xf32>
    %13 = arith.addf %11, %12 : vector<4x2x8x128xf32>
    %14 = vector.shape_cast %5 : vector<64x128xf32> to vector<4x2x8x128xf32>
    %15 = vector.shape_cast %1 : vector<1x128xf32> to vector<1x1x1x128xf32>
    %16 = vector.broadcast %15 : vector<1x1x1x128xf32> to vector<4x2x8x128xf32>
    %17 = arith.addf %14, %16 : vector<4x2x8x128xf32>
    %18 = vector.broadcast %7 : vector<4x1x8x128xf32> to vector<4x2x8x128xf32>
    %19 = arith.addf %17, %18 : vector<4x2x8x128xf32>
    %20 = vector.shape_cast %13 : vector<4x2x8x128xf32> to vector<64x128xf32>
    %c0_7 = arith.constant 0 : index
    %c0_8 = arith.constant 0 : index
    %21 = vector.load %arg5[%c0_7, %c0_8] : memref<64x256xf32, #tpu.memory_space<vmem>>, vector<64x128xf32>
    tpu.vector_store %arg5[%c0_7, %c0_8], %20 {strides = array<i32>} : memref<64x256xf32, #tpu.memory_space<vmem>>, vector<64x128xf32>,
    %22 = vector.shape_cast %19 : vector<4x2x8x128xf32> to vector<64x128xf32>
    %c0_9 = arith.constant 0 : index
    %c128 = arith.constant 128 : index
    %23 = vector.load %arg5[%c0_9, %c128] : memref<64x256xf32, #tpu.memory_space<vmem>>, vector<64x128xf32>
    tpu.vector_store %arg5[%c0_9, %c128], %22 {strides = array<i32>} : memref<64x256xf32, #tpu.memory_space<vmem>>, vector<64x128xf32>,
    return
  }
  func.func @transform_0(%arg0: i32) -> (i32, i32) {
    %c0_i32 = arith.constant 0 : i32
    %c0_i32_0 = arith.constant 0 : i32
    return %arg0, %c0_i32 : i32, i32
  }
  func.func @transform_1(%arg0: i32) -> (i32, i32) {
    %c0_i32 = arith.constant 0 : i32
    %c0_i32_0 = arith.constant 0 : i32
    %c0_i32_1 = arith.constant 0 : i32
    return %c0_i32, %c0_i32_0 : i32, i32
  }
  func.func @transform_2(%arg0: i32) -> (i32, i32) {
    %c0_i32 = arith.constant 0 : i32
    %c0_i32_0 = arith.constant 0 : i32
    %c0_i32_1 = arith.constant 0 : i32
    return %c0_i32, %c0_i32_0 : i32, i32
  }
  func.func @transform_3(%arg0: i32) -> (i32, i32) {
    %c0_i32 = arith.constant 0 : i32
    %c0_i32_0 = arith.constant 0 : i32
    return %arg0, %c0_i32 : i32, i32
  }
  func.func @transform_4(%arg0: i32) -> (i32, i32) {
    %c0_i32 = arith.constant 0 : i32
    %c0_i32_0 = arith.constant 0 : i32
    return %arg0, %c0_i32 : i32, i32
  }
}

</mosaic_0001>

<bundles_post_ra>
// kernel: fpn_block.1
= control target key start
LH: loop header
LB: loop body
LE: loop exit
PB: predicated region body
PF: predicated region fallthrough
CT: control target
= control target key end

     0   :  { %s571_s15 = smov 0   ;;  %s640_s0 = inlined_call_operand.vmem [shape: f32[256,8], index: 0, kind: input, shape index: {}]   ;;  %s641_s1 = inlined_call_operand.vmem [shape: f32[8,256], index: 1, kind: input, shape index: {}]   ;;  %s642_s2 = inlined_call_operand.vmem [shape: f32[1,128], index: 2, kind: input, shape index: {}]   ;;  %s643_s3 = inlined_call_operand.vmem [shape: f32[128,128], index: 3, kind: input, shape index: {}]   ;;  %s644_s4 = inlined_call_operand.vmem [shape: f32[256,256], index: 4, kind: output, shape index: {}]  }
   0x1 LB: > { %s502_s16 = sadd.s32 4294967295, %s543_s15   ;;  %p506_p0 = scmp.ge.s32.totalorder %s543_s15, 1  ;;  %s543_s15 = sphi %s571_s15, %s14_s15  }
   0x2   : > { %p174_p1 = scmp.lt.s32.totalorder %s543_s15, 5 }
   0x4   : > { %p175_p2 = pnand %p506_p0, %p174_p1 }
   0x5   : > { %v226_v0 = vld [vmem:[%s641_s1 + $0x8] sm:$0xff] (!%p175_p2)  ;;  %v225_v1 = vld [vmem:[%s641_s1] sm:$0xff] (!%p175_p2)  ;;  %s507_s21 = sshll.u32 (!%p175_p2), %s502_s16, 3  ;;  %v545_v2 = vmov (!%p175_p2), 0.0   ;;  %vm236_vm0 = vcmask (!%p175_p2), 64512   ;;  %s509_s26 = sshll.u32 (!%p175_p2), %s502_s16, 2 }
   0x6   : > { %178 = sbr.rel (%p175_p2) target bundleno = 248 (0xf8), region = 36  ;;  %261 = vmatprep.subr.mxu0 (!%p175_p2), %v226_v0  ;;  %526 = vmatprep.subr.mxu1 (!%p175_p2), %v226_v0  ;;  %p207_p3 = scmp.lt.s32.totalorder (!%p175_p2), %s507_s21, 31  ;;  %v522_v11 = vld [vmem:[%s642_s2] ss:$0 sm:$0xff] (!%p175_p2) }
   0x7   : > { %262 = vmatpush1.msra.mxu0 (!%p175_p2), %v225_v1  ;;  %527 = vmatpush1.msra.mxu1 (!%p175_p2), %v225_v1  ;;  %p213_p4 = scmp.lt.s32.totalorder (!%p175_p2), %s509_s26, 15 }
   0x8   : > { %325 = vmatprep.mubr.f32.mxu0 (!%p175_p2), %v545_v2  ;;  %349 = vmatprep.mubr.f32.mxu1 (!%p175_p2), %v545_v2 }
   0xd   : > { %s646_s21 = smov (!%p207_p3, %s507_s21), 31  ;;  %s648_s26 = smov (!%p213_p4, %s509_s26), 15 }
   0xe   : > { %s508_s22 = sshll.u32 %s646_s21, 3  ;;  %s510_s27 = sshll.u32 %s648_s26, 3 }
   0xf   : > { %s210_s25 = scalar_lea.vmem %s640_s0, %s508_s22  ;;  %s606_s30 = scalar_lea.vmem %s643_s3, %s510_s27 }
  0x10   : > { %v228_v3 = vld [vmem:[%s210_s25] sm:$0xff]  ;;  %v229_v5 = vld [vmem:[%s210_s25 + $0x8] sm:$0xff]  ;;  %v230_v7 = vld [vmem:[%s210_s25 + $0x10] sm:$0xff]  ;;  %s525_s7 = sshll.u32 %s646_s21, 4 }
  0x11   : > { %v232_v4 = vld [vmem:[%s210_s25 + $0x20] sm:$0xff]  ;;  %514 = vmatmul.mubr.msk.f32.vlgmr.msra.gmra.mrb[0].mxu0 %vm236_vm0, %v228_v3  ;;  %v233_v6 = vld [vmem:[%s210_s25 + $0x28] sm:$0xff]  ;;  %v234_v8 = vld [vmem:[%s210_s25 + $0x30] sm:$0xff]  ;;  %s617_s10 = scalar_lea.vmem %s644_s4, %s525_s7 }
  0x12   : > { %518 = vmatmul.mubr.msk.f32.vlgmr.msra.gmra.mrb[0].mxu1 %vm236_vm0, %v232_v4  ;;  %331 = vmatprep.mubr.f32.mxu0 %v545_v2  ;;  %v231_v9 = vld [vmem:[%s210_s25 + $0x18] sm:$0xff]  ;;  %v374_v13 = vld [vmem:[%s606_s30] sm:$0xff]  ;;  %v376_v15 = vld [vmem:[%s606_s30 + $0x10] sm:$0xff] }
  0x13   : > { %355 = vmatprep.mubr.f32.mxu1 %v545_v2  ;;  %v235_v10 = vld [vmem:[%s210_s25 + $0x38] sm:$0xff]  ;;  %v375_v39 = vld [vmem:[%s606_s30 + $0x8] sm:$0xff] }
  0x14   : > { %v377_v41 = vld [vmem:[%s606_s30 + $0x18] sm:$0xff] }
  0x15   : > { %515 = vmatmul.mubr.msk.f32.gmra.mrb[2].mxu0 %vm236_vm0, %v229_v5 }
  0x16   : > { %519 = vmatmul.mubr.msk.f32.gmra.mrb[2].mxu1 %vm236_vm0, %v233_v6  ;;  %337 = vmatprep.mubr.f32.mxu0 %v545_v2 }
  0x17   : > { %361 = vmatprep.mubr.f32.mxu1 %v545_v2 }
  0x19   : > { %516 = vmatmul.mubr.msk.f32.gmra.mrb[4].mxu0 %vm236_vm0, %v230_v7 }
  0x1a   : > { %520 = vmatmul.mubr.msk.f32.gmra.mrb[4].mxu1 %vm236_vm0, %v234_v8  ;;  %343 = vmatprep.mubr.f32.mxu0 %v545_v2 }
  0x1b   : > { %367 = vmatprep.mubr.f32.mxu1 %v545_v2 }
  0x1d   : > { %517 = vmatmul.mubr.msk.f32.gmra.mrb[6].mxu0 %vm236_vm0, %v231_v9 }
  0x1e   : > { %521 = vmatmul.mubr.msk.f32.gmra.mrb[6].mxu1 %vm236_vm0, %v235_v10 }
  0xe4   : > { %v327_v12 = vpop.f32.mrb[0].mxu0 }
  0xe5   : > { %v351_v14 = vpop.f32.mrb[0].mxu1  ;;  %v384_v16 = vadd.f32 %v522_v11, %v327_v12  ;;  %v329_v18 = vpop.f32.mrb[1].mxu0 }
  0xe6   : > { %v388_v17 = vadd.f32 %v522_v11, %v351_v14  ;;  %v353_v19 = vpop.f32.mrb[1].mxu1  ;;  %v400_v20 = vadd.f32 %v522_v11, %v329_v18 }
  0xe7   : > { %v404_v21 = vadd.f32 %v522_v11, %v353_v19  ;;  %v392_v22 = vadd.f32 %v384_v16, %v374_v13 }
  0xe8   : > { %v396_v23 = vadd.f32 %v388_v17, %v376_v15  ;;  %v408_v24 = vadd.f32 %v400_v20, %v374_v13  ;;  %v333_v26 = vpop.f32.mrb[2].mxu0 }
  0xe9   : > { %v412_v25 = vadd.f32 %v404_v21, %v376_v15  ;;  %v357_v27 = vpop.f32.mrb[2].mxu1  ;;  %416 = vst [vmem:[%s617_s10] sm:$0xff] %v392_v22  ;;  %v385_v28 = vadd.f32 %v522_v11, %v333_v26  ;;  %v335_v30 = vpop.f32.mrb[3].mxu0 }
  0xea   : > { %420 = vst [vmem:[%s617_s10 + $0x40] sm:$0xff] %v396_v23  ;;  %v389_v29 = vadd.f32 %v522_v11, %v357_v27  ;;  %v359_v31 = vpop.f32.mrb[3].mxu1  ;;  %424 = vst [vmem:[%s617_s10 + $0x8] sm:$0xff] %v408_v24  ;;  %v401_v32 = vadd.f32 %v522_v11, %v335_v30 }
  0xeb   : > { %428 = vst [vmem:[%s617_s10 + $0x48] sm:$0xff] %v412_v25  ;;  %v405_v33 = vadd.f32 %v522_v11, %v359_v31  ;;  %v393_v34 = vadd.f32 %v385_v28, %v374_v13 }
  0xec   : > { %v397_v35 = vadd.f32 %v389_v29, %v376_v15  ;;  %v409_v36 = vadd.f32 %v401_v32, %v374_v13  ;;  %v339_v38 = vpop.f32.mrb[4].mxu0 }
  0xed   : > { %v413_v37 = vadd.f32 %v405_v33, %v376_v15  ;;  %v363_v40 = vpop.f32.mrb[4].mxu1  ;;  %417 = vst [vmem:[%s617_s10 + $0x10] sm:$0xff] %v393_v34  ;;  %v386_v42 = vadd.f32 %v522_v11, %v339_v38  ;;  %v341_v44 = vpop.f32.mrb[5].mxu0 }
  0xee   : > { %421 = vst [vmem:[%s617_s10 + $0x50] sm:$0xff] %v397_v35  ;;  %v390_v43 = vadd.f32 %v522_v11, %v363_v40  ;;  %v365_v45 = vpop.f32.mrb[5].mxu1  ;;  %425 = vst [vmem:[%s617_s10 + $0x18] sm:$0xff] %v409_v36  ;;  %v402_v46 = vadd.f32 %v522_v11, %v341_v44 }
  0xef   : > { %429 = vst [vmem:[%s617_s10 + $0x58] sm:$0xff] %v413_v37  ;;  %v406_v47 = vadd.f32 %v522_v11, %v365_v45  ;;  %v394_v48 = vadd.f32 %v386_v42, %v375_v39 }
  0xf0   : > { %v398_v49 = vadd.f32 %v390_v43, %v377_v41  ;;  %v410_v50 = vadd.f32 %v402_v46, %v375_v39  ;;  %v345_v52 = vpop.f32.mrb[6].mxu0 }
  0xf1   : > { %v414_v51 = vadd.f32 %v406_v47, %v377_v41  ;;  %v369_v53 = vpop.f32.mrb[6].mxu1  ;;  %418 = vst [vmem:[%s617_s10 + $0x20] sm:$0xff] %v394_v48  ;;  %v387_v54 = vadd.f32 %v522_v11, %v345_v52  ;;  %v347_v56 = vpop.f32.mrb[7].mxu0 }
  0xf2   : > { %422 = vst [vmem:[%s617_s10 + $0x60] sm:$0xff] %v398_v49  ;;  %v391_v55 = vadd.f32 %v522_v11, %v369_v53  ;;  %v371_v57 = vpop.f32.mrb[7].mxu1  ;;  %426 = vst [vmem:[%s617_s10 + $0x28] sm:$0xff] %v410_v50  ;;  %v403_v58 = vadd.f32 %v522_v11, %v347_v56 }
  0xf3   : > { %430 = vst [vmem:[%s617_s10 + $0x68] sm:$0xff] %v414_v51  ;;  %v407_v59 = vadd.f32 %v522_v11, %v371_v57  ;;  %v395_v60 = vadd.f32 %v387_v54, %v375_v39 }
  0xf4   : > { %v399_v61 = vadd.f32 %v391_v55, %v377_v41  ;;  %v411_v62 = vadd.f32 %v403_v58, %v375_v39 }
  0xf5   : > { %v415_v63 = vadd.f32 %v407_v59, %v377_v41  ;;  %419 = vst [vmem:[%s617_s10 + $0x30] sm:$0xff] %v395_v60 }
  0xf6   : > { %423 = vst [vmem:[%s617_s10 + $0x70] sm:$0xff] %v399_v61  ;;  %427 = vst [vmem:[%s617_s10 + $0x38] sm:$0xff] %v411_v62 }
  0xf7   : > { %431 = vst [vmem:[%s617_s10 + $0x78] sm:$0xff] %v415_v63 }
  0xf8 PF: > { %s14_s15 = sadd.s32 1, %s543_s15  }
  0xf9   : > { %p11_p5 = scmp.ge.s32.totalorder %s14_s15, 6  }
  0xfb   :  { %13 = sbr.rel (!%p11_p5) target bundleno = 1 (0x1), region = 69 }

</bundles_post_ra>
